<compile_context>
chip_gen: v6e
topology: v6e:2x2x1
jax: 0.10.0
libtpu: 0.0.40
codegen_flags: <defaults>
</compile_context>

<pallas_src>
import functools

import jax
import jax.numpy as jnp
from jax.experimental import pallas as pl
from jax.experimental.pallas import tpu as pltpu

BETA = 0.11  # default from the module's __init__


def _smooth_l1_kernel(pred_ref, target_ref, out_ref, *, beta, half_inv_beta):
    # element-wise Huber: 0.5*x^2/beta if |x| < beta else |x| - 0.5*beta
    x = jnp.abs(pred_ref[...].astype(jnp.float32) - target_ref[...].astype(jnp.float32))
    l1 = x - 0.5 * beta
    l2 = (x * x) * half_inv_beta           # scalar 0.5/beta folded at trace time
    out_ref[...] = jnp.where(x >= beta, l1, l2).astype(out_ref.dtype)


def smooth_l1_loss(pred, target, beta=BETA):
    """Element-wise SmoothL1 loss, matching the PyTorch module (no reduction)."""
    assert pred.shape == target.shape and pred.dtype == target.dtype
    assert beta > 0.0, "beta must be positive"
    orig_shape = pred.shape
    n = pred.size

    itemsize = jnp.dtype(pred.dtype).itemsize
    # sublane granularity for packed dtypes: f32 -> 8, bf16 -> 16, 8-bit -> 32
    sublane = {4: 8, 2: 16, 1: 32}.get(itemsize, 8)

    # Prefer a wide lane dim (multiple of 128) that divides n exactly -> no pad copy.
    lane = None
    for cand in (4096, 2048, 1024, 512, 256, 128):
        if n % cand == 0:
            lane = cand
            break
    if lane is None:
        lane = 1024  # ragged total size: pad the flat tail (rare path)

    rows = pl.cdiv(n, lane)
    padded_n = rows * lane

    # ~2 MiB per buffer keeps the double-buffered 3-array footprint (~12 MiB)
    # inside every generation's default scoped-VMEM limit while staying near
    # the HBM roofline.
    target_bytes = 2 * 1024 * 1024
    tile_rows = max(sublane, (target_bytes // (lane * itemsize)) // sublane * sublane)
    if rows <= tile_rows:
        tile_rows = rows  # single block spanning the full (small) slab
    grid = (pl.cdiv(rows, tile_rows),)

    def to_slab(a):
        flat = a.reshape(-1)
        if padded_n != n:
            flat = jnp.pad(flat, (0, padded_n - n))
        return flat.reshape(rows, lane)

    pred2d = to_slab(pred)
    target2d = to_slab(target)

    kernel = functools.partial(
        _smooth_l1_kernel, beta=float(beta), half_inv_beta=0.5 / float(beta)
    )

    out2d = pl.pallas_call(
        kernel,
        out_shape=jax.ShapeDtypeStruct((rows, lane), pred.dtype),
        grid_spec=pltpu.PrefetchScalarGridSpec(
            num_scalar_prefetch=0,
            grid=grid,
            in_specs=[
                pl.BlockSpec((tile_rows, lane), lambda i: (i, 0)),
                pl.BlockSpec((tile_rows, lane), lambda i: (i, 0)),
            ],
            out_specs=pl.BlockSpec((tile_rows, lane), lambda i: (i, 0)),
        ),
        compiler_params=pltpu.CompilerParams(
            dimension_semantics=("parallel",),
        ),
    )(pred2d, target2d)

    if padded_n != n:
        return out2d.reshape(-1)[:n].reshape(orig_shape)
    return out2d.reshape(orig_shape)


def _reference(pred, target, beta=BETA):
    x = jnp.abs(pred.astype(jnp.float32) - target.astype(jnp.float32))
    return jnp.where(x >= beta, x - 0.5 * beta, 0.5 * x * x / beta).astype(pred.dtype)


if __name__ == "__main__":
    key = jax.random.PRNGKey(0)
    k1, k2 = jax.random.split(key)
    # small NCHW-shaped "box regression" tensors
    shape = (2, 4, 16, 16)
    pred = jax.random.normal(k1, shape, dtype=jnp.float32)
    target = jax.random.normal(k2, shape, dtype=jnp.float32)

    out = smooth_l1_loss(pred, target)
    out = jax.block_until_ready(out)

    ref = _reference(pred, target)
    assert out.shape == shape
    assert jnp.allclose(out, ref, atol=1e-6, rtol=1e-6), "mismatch vs reference"
    print("KERNEL_OK")
</pallas_src>

<mosaic_0001>
module attributes {stable_mosaic.version = 11 : i64} {
  func.func @_smooth_l1_kernel(%arg0: i32, %arg1: memref<1x2048xf32, #tpu.memory_space<vmem>>, %arg2: memref<1x2048xf32, #tpu.memory_space<vmem>>, %arg3: memref<1x2048xf32, #tpu.memory_space<vmem>>) attributes {dimension_semantics = [#tpu.dimension_semantics<parallel>], iteration_bounds = array<i64: 1>, scalar_prefetch = 0 : i64, scratch_operands = 0 : i64, tpu.core_type = #tpu.core_type<tc>, window_params = [{transform_indices = @transform_0, window_bounds = array<i64: 1, 2048>}, {transform_indices = @transform_1, window_bounds = array<i64: 1, 2048>}, {transform_indices = @transform_2, window_bounds = array<i64: 1, 2048>}]} {
    %c0 = arith.constant 0 : index
    %c0_0 = arith.constant 0 : index
    %0 = vector.load %arg1[%c0, %c0_0] : memref<1x2048xf32, #tpu.memory_space<vmem>>, vector<1x2048xf32>
    %c0_1 = arith.constant 0 : index
    %c0_2 = arith.constant 0 : index
    %1 = vector.load %arg2[%c0_1, %c0_2] : memref<1x2048xf32, #tpu.memory_space<vmem>>, vector<1x2048xf32>
    %2 = arith.subf %0, %1 : vector<1x2048xf32>
    %3 = math.absf %2 : vector<1x2048xf32>
    %cst = arith.constant 5.500000e-02 : f32
    %4 = vector.broadcast %cst : f32 to vector<1x2048xf32>
    %5 = arith.subf %3, %4 : vector<1x2048xf32>
    %6 = arith.mulf %3, %3 : vector<1x2048xf32>
    %cst_3 = arith.constant 4.5454545 : f32
    %7 = vector.broadcast %cst_3 : f32 to vector<1x2048xf32>
    %8 = arith.mulf %6, %7 : vector<1x2048xf32>
    %cst_4 = arith.constant 1.100000e-01 : f32
    %9 = vector.broadcast %cst_4 : f32 to vector<1x2048xf32>
    %10 = arith.cmpf oge, %3, %9 : vector<1x2048xf32>
    %11 = arith.select %10, %5, %8 : vector<1x2048xi1>, vector<1x2048xf32>
    %c0_5 = arith.constant 0 : index
    %c0_6 = arith.constant 0 : index
    %12 = vector.load %arg3[%c0_5, %c0_6] : memref<1x2048xf32, #tpu.memory_space<vmem>>, vector<1x2048xf32>
    tpu.vector_store %arg3[%c0_5, %c0_6], %11 {strides = array<i32>} : memref<1x2048xf32, #tpu.memory_space<vmem>>, vector<1x2048xf32>,
    return
  }
  func.func @transform_0(%arg0: i32) -> (i32, i32) {
    %c0_i32 = arith.constant 0 : i32
    %c0_i32_0 = arith.constant 0 : i32
    return %arg0, %c0_i32 : i32, i32
  }
  func.func @transform_1(%arg0: i32) -> (i32, i32) {
    %c0_i32 = arith.constant 0 : i32
    %c0_i32_0 = arith.constant 0 : i32
    return %arg0, %c0_i32 : i32, i32
  }
  func.func @transform_2(%arg0: i32) -> (i32, i32) {
    %c0_i32 = arith.constant 0 : i32
    %c0_i32_0 = arith.constant 0 : i32
    return %arg0, %c0_i32 : i32, i32
  }
}

</mosaic_0001>

<bundles_post_ra>
// kernel: tpu_custom_call.1
= control target key start
LH: loop header
LB: loop body
LE: loop exit
PB: predicated region body
PF: predicated region fallthrough
CT: control target
= control target key end

     0   :  { %7 = vsyncpa [#allocation3], 0  ;;  %s170_s0 = inlined_call_operand.hbm [shape: f32[1,2048], index: 0, kind: input, shape index: {}]   ;;  %s171_s1 = inlined_call_operand.hbm [shape: f32[1,2048], index: 1, kind: input, shape index: {}]   ;;  %s172_s2 = inlined_call_operand.hbm [shape: f32[1,2048], index: 2, kind: output, shape index: {}]  }
   0x1   :  { %8 = vsyncpa [#allocation6], 0 }
   0x2   :  { %9 = vsyncpa [#allocation4], 0  ;;  %s143_s9 = smov [#allocation2]   ;;  %s144_s11 = smov [#allocation5]  }
   0x3   :  { %s16_s10 = sshll.u32 %s143_s9, 4  ;;  %s26_s12 = sshll.u32 %s144_s11, 4  ;;  %s17_s10 = int_to_ptr.vmem [resolvable:$true] %s16_s10  ;;  %s27_s12 = int_to_ptr.vmem [resolvable:$true] %s26_s12 }
   0x4   :  { %s85_s13 = scalar_lea.vmem %s17_s10, 256  ;;  %p90_p1 = scmp.lt.s32.totalorder %s17_s10, %s17_s10 }
   0x5   :  { %p86_p0 = scmp.ne.s32.totalorder %s17_s10, %s85_s13  ;;  %p91_p2 = scmp.lt.s32.totalorder %s85_s13, %s85_s13 }
   0x7   :  { %p92_p3 = por %p91_p2, %p90_p1 }
   0x9   :  { %p93_p4 = pnand %p92_p3, %p86_p0 }
   0xb   :  { %96 = shalt.err (!%p93_p4)
}
   0xc   :  { %19 = dma.hbm_to_vmem [thread:$0]  %s170_s0, 256, %s17_s10, [#allocation3]  }
   0xd   :  { %s105_s16 = scalar_lea.vmem %s27_s12, 256  ;;  %p110_p6 = scmp.lt.s32.totalorder %s27_s12, %s27_s12 }
   0xe   :  { %p106_p5 = scmp.ne.s32.totalorder %s27_s12, %s105_s16  ;;  %p111_p7 = scmp.lt.s32.totalorder %s105_s16, %s105_s16 }
  0x10   :  { %p112_p8 = por %p111_p7, %p110_p6 }
  0x12   :  { %p113_p9 = pnand %p112_p8, %p106_p5 }
  0x14   :  { %116 = shalt.err (!%p113_p9)
}
  0x15   :  { %29 = dma.hbm_to_vmem [thread:$0]  %s171_s1, 256, %s27_s12, [#allocation6]  }
  0x16   :  { %137 = dma.done.wait [#allocation3], 256  }
  0x17   :  { %138 = vsyncadd [#allocation3], 4294967040 }
  0x18   :  { %139 = dma.done.wait [#allocation6], 256  }
  0x19   :  { %140 = vsyncadd [#allocation6], 4294967040  ;;  %v36_v0 = vld [vmem:[#allocation2] sm:$0xff]  ;;  %v38_v1 = vld [vmem:[#allocation5] sm:$0xff]  ;;  %s145_s0 = smov [#allocation7]  }
  0x1a   :  { %v37_v2 = vld [vmem:[#allocation2 + $0x8] sm:$0xff]  ;;  %v40_v3 = vsub.f32 %v36_v0, %v38_v1  ;;  %v39_v4 = vld [vmem:[#allocation5 + $0x8] sm:$0xff]  ;;  %s62_s19 = sshll.u32 %s145_s0, 4  ;;  %s63_s19 = int_to_ptr.vmem [resolvable:$true] %s62_s19 }
  0x1b   :  { %v41_v5 = vsub.f32 %v37_v2, %v39_v4  ;;  %s117_s1 = scalar_lea.vmem %s63_s19, 256  ;;  %p122_p11 = scmp.lt.s32.totalorder %s63_s19, %s63_s19 }
  0x1c   :  { %v42_v6 = vand.u32 2147483647, %v40_v3  ;;  %p118_p10 = scmp.ne.s32.totalorder %s63_s19, %s117_s1  ;;  %p123_p12 = scmp.lt.s32.totalorder %s117_s1, %s117_s1 }
  0x1d   :  { %v43_v7 = vand.u32 2147483647, %v41_v5 }
  0x1e   :  { %v72_v8 = vadd.f32 -0.055, %v42_v6  ;;  %v46_v9 = vmul.f32 %v42_v6, %v42_v6  ;;  %vm50_vm0 = vcmp.ge.f32.partialorder %v42_v6, 0.11  ;;  %p124_p13 = por %p123_p12, %p122_p11 }
  0x1f   :  { %v73_v10 = vadd.f32 -0.055, %v43_v7  ;;  %v47_v11 = vmul.f32 %v43_v7, %v43_v7  ;;  %vm51_vm1 = vcmp.ge.f32.partialorder %v43_v7, 0.11 }
  0x20   :  { %v48_v12 = vmul.f32 4.5454545, %v46_v9  ;;  %p125_p0 = pnand %p124_p13, %p118_p10 }
  0x21   :  { %v49_v13 = vmul.f32 4.5454545, %v47_v11 }
  0x22   :  { %v52_v14 = vsel %vm50_vm0, %v72_v8, %v48_v12 }
  0x23   :  { %54 = vst [vmem:[#allocation7] sm:$0xff] %v52_v14  ;;  %v53_v15 = vsel %vm51_vm1, %v73_v10, %v49_v13 }
  0x24   :  { %55 = vst [vmem:[#allocation7 + $0x8] sm:$0xff] %v53_v15 }
  0x25   :  { %128 = shalt.err (!%p125_p0)
}
  0x26   :  { %65 = dma.vmem_to_hbm [thread:$0]  %s63_s19, 256, %s172_s2, [#allocation4]  }
  0x27   :  { %141 = dma.done.wait [#allocation4], 256  }
  0x28   :  { %142 = vsyncadd [#allocation4], 4294967040 }
  0x29   :  { %69 = vsyncpa [#allocation3], 1 }
  0x2a   :  { %70 = vsyncpa [#allocation6], 1 }
  0x2b   :  { %71 = vsyncpa [#allocation4], 1 }

</bundles_post_ra>
